<compile_context>
chip_gen: v5e
topology: v5e:2x2
jax: 0.10.0
libtpu: 0.0.40
codegen_flags: <defaults>
</compile_context>

<pallas_src>
import functools

import jax
import jax.numpy as jnp
import numpy as np
from jax.experimental import pallas as pl
from jax.experimental.pallas import tpu as pltpu

EPS = 1e-6
VMEM_LIMIT_BYTES = 64 * 1024 * 1024


# ----------------------------- in-kernel helpers -----------------------------

def _gelu_tanh(x):
    c = 0.7978845608028654  # sqrt(2/pi)
    return 0.5 * x * (1.0 + jnp.tanh(c * (x + 0.044715 * x * x * x)))


def _layernorm(x):
    mu = jnp.mean(x, axis=-1, keepdims=True)
    var = jnp.mean((x - mu) ** 2, axis=-1, keepdims=True)
    return (x - mu) * jax.lax.rsqrt(var + EPS)


def _cparams(*sems):
    return pltpu.CompilerParams(dimension_semantics=sems,
                                vmem_limit_bytes=VMEM_LIMIT_BYTES)


def _seq_tile(s, target=256):
    # Largest clean tile: full sequence for toy shapes, `target` at real shapes.
    return target if (s >= target and s % target == 0) else s


# --------------------------------- kernels -----------------------------------

def qkv_kernel(x_ref, shift_ref, scale_ref, w_ref, b_ref, o_ref):
    """LayerNorm + AdaLN(msa) modulation + fused lane-dense QKV projection.

    x: (1, TS, D) f32, shift/scale: (1, 1, D) f32 (hoisted AdaLN emb slices),
    w: (D, 3D) bf16, b: (1, 3D) f32, out: (1, TS, 3D) bf16.
    """
    xn = _layernorm(x_ref[0]) * (1.0 + scale_ref[0]) + shift_ref[0]       # f32
    qkv = jnp.dot(xn.astype(jnp.bfloat16), w_ref[...],
                  preferred_element_type=jnp.float32) + b_ref[...]
    o_ref[0] = qkv.astype(o_ref.dtype)


def flash_attn_kernel(q_ref, k_ref, v_ref, o_ref, m_sc, l_sc, acc_sc, *, scale):
    """Flash-style joint attention: one (batch, head, q-tile) per program,
    KV tiles streamed along the innermost ("arbitrary") grid axis."""
    ki = pl.program_id(3)

    @pl.when(ki == 0)
    def _():
        m_sc[...] = jnp.full_like(m_sc, -jnp.inf)
        l_sc[...] = jnp.zeros_like(l_sc)
        acc_sc[...] = jnp.zeros_like(acc_sc)

    q = q_ref[0, 0]                                                       # (TQ, Dh) bf16
    k = k_ref[0, 0]                                                       # (TK, Dh) bf16
    v = v_ref[0, 0]                                                       # (TK, Dh) bf16

    # K-transpose expressed through dot_general (no materialized k.T).
    s = jax.lax.dot_general(q, k, (((1,), (1,)), ((), ())),
                            preferred_element_type=jnp.float32) * scale   # (TQ, TK) f32

    m_prev = m_sc[...]
    m_new = jnp.maximum(m_prev, jnp.max(s, axis=-1, keepdims=True))
    alpha = jnp.exp(m_prev - m_new)
    p = jnp.exp(s - m_new)
    l_sc[...] = alpha * l_sc[...] + jnp.sum(p, axis=-1, keepdims=True)
    acc_sc[...] = alpha * acc_sc[...] + jnp.dot(
        p.astype(v.dtype), v, preferred_element_type=jnp.float32)
    m_sc[...] = m_new

    @pl.when(ki == pl.num_programs(3) - 1)
    def _():
        # Exact divide keeps the correctness check tight; use
        # pl.reciprocal(..., approx=True) in production.
        o_ref[0, 0] = (acc_sc[...] / l_sc[...]).astype(o_ref.dtype)


def epilogue_kernel(attn_ref, res_ref, gmsa_ref, smlp_ref, scmlp_ref, gmlp_ref,
                    wo_ref, bo_ref, w1_ref, b1_ref, w2_ref, b2_ref, o_ref):
    """Fused: out-proj + gated residual + norm2/modulation + gelu-tanh MLP + gated residual."""
    attn_out = jnp.dot(attn_ref[0], wo_ref[...],
                       preferred_element_type=jnp.float32) + bo_ref[...]  # (TS, D) f32
    h = res_ref[0] + gmsa_ref[0] * attn_out                               # f32 residual

    xn = _layernorm(h) * (1.0 + scmlp_ref[0]) + smlp_ref[0]
    hid = _gelu_tanh(jnp.dot(xn.astype(jnp.bfloat16), w1_ref[...],
                             preferred_element_type=jnp.float32) + b1_ref[...])
    ff = jnp.dot(hid.astype(jnp.bfloat16), w2_ref[...],
                 preferred_element_type=jnp.float32) + b2_ref[...]
    o_ref[0] = (h + gmlp_ref[0] * ff).astype(o_ref.dtype)


# -------------------------------- wrappers ------------------------------------

def qkv_projection(x, shift_msa, scale_msa, w_qkv_bf16, b_qkv):
    B, S, D = x.shape
    TS = _seq_tile(S)
    return pl.pallas_call(
        qkv_kernel,
        out_shape=jax.ShapeDtypeStruct((B, S, 3 * D), jnp.bfloat16),
        grid=(B, S // TS),
        in_specs=[
            pl.BlockSpec((1, TS, D), lambda b, s: (b, s, 0)),
            pl.BlockSpec((1, 1, D), lambda b, s: (b, 0, 0)),
            pl.BlockSpec((1, 1, D), lambda b, s: (b, 0, 0)),
            pl.BlockSpec((D, 3 * D), lambda b, s: (0, 0)),
            pl.BlockSpec((1, 3 * D), lambda b, s: (0, 0)),
        ],
        out_specs=pl.BlockSpec((1, TS, 3 * D), lambda b, s: (b, s, 0)),
        compiler_params=_cparams("parallel", "parallel"),
    )(x, shift_msa, scale_msa, w_qkv_bf16, b_qkv)


def joint_flash_attention(q, k, v, *, tq=128, tk=128):
    B, H, S, Dh = q.shape
    TQ = _seq_tile(S, tq)
    TK = _seq_tile(S, tk)
    scale = 1.0 / (Dh ** 0.5)
    kern = functools.partial(flash_attn_kernel, scale=scale)
    return pl.pallas_call(
        kern,
        out_shape=jax.ShapeDtypeStruct((B, H, S, Dh), q.dtype),
        grid=(B, H, S // TQ, S // TK),
        in_specs=[
            pl.BlockSpec((1, 1, TQ, Dh), lambda b, h, qi, ki: (b, h, qi, 0)),
            pl.BlockSpec((1, 1, TK, Dh), lambda b, h, qi, ki: (b, h, ki, 0)),
            pl.BlockSpec((1, 1, TK, Dh), lambda b, h, qi, ki: (b, h, ki, 0)),
        ],
        out_specs=pl.BlockSpec((1, 1, TQ, Dh), lambda b, h, qi, ki: (b, h, qi, 0)),
        scratch_shapes=[
            pltpu.VMEM((TQ, 1), jnp.float32),   # running max
            pltpu.VMEM((TQ, 1), jnp.float32),   # running denom
            pltpu.VMEM((TQ, Dh), jnp.float32),  # f32 accumulator
        ],
        compiler_params=_cparams("parallel", "parallel", "parallel", "arbitrary"),
    )(q, k, v)


def attn_out_ff(attn, resid, gate_msa, shift_mlp, scale_mlp, gate_mlp,
                w_out, b_out, w1, b1, w2, b2):
    B, S, D = resid.shape
    Dff = w1.shape[1]
    TS = _seq_tile(S)
    return pl.pallas_call(
        epilogue_kernel,
        out_shape=jax.ShapeDtypeStruct((B, S, D), resid.dtype),
        grid=(B, S // TS),
        in_specs=[
            pl.BlockSpec((1, TS, D), lambda b, s: (b, s, 0)),   # attn (bf16)
            pl.BlockSpec((1, TS, D), lambda b, s: (b, s, 0)),   # residual (f32)
            pl.BlockSpec((1, 1, D), lambda b, s: (b, 0, 0)),    # gate_msa
            pl.BlockSpec((1, 1, D), lambda b, s: (b, 0, 0)),    # shift_mlp
            pl.BlockSpec((1, 1, D), lambda b, s: (b, 0, 0)),    # scale_mlp
            pl.BlockSpec((1, 1, D), lambda b, s: (b, 0, 0)),    # gate_mlp
            pl.BlockSpec((D, D), lambda b, s: (0, 0)),          # wo (bf16)
            pl.BlockSpec((1, D), lambda b, s: (0, 0)),
            pl.BlockSpec((D, Dff), lambda b, s: (0, 0)),        # w1 (bf16)
            pl.BlockSpec((1, Dff), lambda b, s: (0, 0)),
            pl.BlockSpec((Dff, D), lambda b, s: (0, 0)),        # w2 (bf16)
            pl.BlockSpec((1, D), lambda b, s: (0, 0)),
        ],
        out_specs=pl.BlockSpec((1, TS, D), lambda b, s: (b, s, 0)),
        compiler_params=_cparams("parallel", "parallel"),
    )(attn, resid, gate_msa, shift_mlp, scale_mlp, gate_mlp,
      w_out, b_out.reshape(1, D), w1, b1.reshape(1, Dff), w2, b2.reshape(1, D))


def joint_transformer_block(hidden_states, encoder_hidden_states, temb, P, heads):
    """Full JointTransformerBlock.forward (context_pre_only=False)."""
    B, N, D = hidden_states.shape
    M = encoder_hidden_states.shape[1]
    S = N + M
    Dh = D // heads
    cdt = jnp.bfloat16

    # ---- hoisted AdaLN-Zero embeddings (tiny; computed once in plain XLA) ----
    emb_h = jax.nn.silu(temb) @ P['ada_w'] + P['ada_b']        # (B, 6D) f32
    emb_c = jax.nn.silu(temb) @ P['ada_w_c'] + P['ada_b_c']    # (B, 6D) f32

    def split6(e):
        return [p.reshape(B, 1, D) for p in jnp.split(e, 6, axis=-1)]

    (h_shift_msa, h_scale_msa, h_gate_msa,
     h_shift_mlp, h_scale_mlp, h_gate_mlp) = split6(emb_h)
    (c_shift_msa, c_scale_msa, c_gate_msa,
     c_shift_mlp, c_scale_mlp, c_gate_mlp) = split6(emb_c)

    # ---- one-time fusion of per-projection weights into bf16 (D, 3D) matmuls ----
    w_qkv_h = jnp.concatenate([P['wq'], P['wk'], P['wv']], axis=1).astype(cdt)
    b_qkv_h = jnp.concatenate([P['bq'], P['bk'], P['bv']], axis=0).reshape(1, 3 * D)
    w_qkv_c = jnp.concatenate([P['waq'], P['wak'], P['wav']], axis=1).astype(cdt)
    b_qkv_c = jnp.concatenate([P['baq'], P['bak'], P['bav']], axis=0).reshape(1, 3 * D)

    # ---- fused AdaLN-modulated QKV projection, per stream, bf16 intermediates ----
    qkv_h = qkv_projection(hidden_states, h_shift_msa, h_scale_msa, w_qkv_h, b_qkv_h)
    qkv_c = qkv_projection(encoder_hidden_states, c_shift_msa, c_scale_msa,
                           w_qkv_c, b_qkv_c)

    # joint sequence [image ; context], head-major layout for the flash kernel
    qkv = jnp.concatenate([qkv_h, qkv_c], axis=1)              # (B, S, 3D) bf16
    qkv = qkv.reshape(B, S, 3, heads, Dh).transpose(2, 0, 3, 1, 4)  # (3, B, H, S, Dh)
    o = joint_flash_attention(qkv[0], qkv[1], qkv[2])          # (B, H, S, Dh) bf16
    o = o.transpose(0, 2, 1, 3).reshape(B, S, D)               # lane-dense (B, S, D)

    # ---- fused epilogue (out-proj + gated residual + norm2 + FFN), per stream ----
    hidden_states = attn_out_ff(
        o[:, :N], hidden_states, h_gate_msa, h_shift_mlp, h_scale_mlp, h_gate_mlp,
        P['wo'].astype(cdt), P['bo'],
        P['ff_w1'].astype(cdt), P['ff_b1'], P['ff_w2'].astype(cdt), P['ff_b2'])
    encoder_hidden_states = attn_out_ff(
        o[:, N:], encoder_hidden_states, c_gate_msa, c_shift_mlp, c_scale_mlp,
        c_gate_mlp,
        P['wao'].astype(cdt), P['bao'],
        P['ffc_w1'].astype(cdt), P['ffc_b1'], P['ffc_w2'].astype(cdt), P['ffc_b2'])
    return encoder_hidden_states, hidden_states


# --------------------------- pure-JAX f32 reference ----------------------------

def reference_forward(h, c, temb, P, heads):
    D = h.shape[-1]

    def ln(x):
        mu = x.mean(-1, keepdims=True)
        var = ((x - mu) ** 2).mean(-1, keepdims=True)
        return (x - mu) / jnp.sqrt(var + EPS)

    def adaln(x, w, b):
        emb = jnp.dot(jax.nn.silu(temb), w) + b
        sm, scm, gm, smlp, scmlp, gmlp = jnp.split(emb, 6, axis=-1)
        return ln(x) * (1 + scm[:, None]) + sm[:, None], gm, smlp, scmlp, gmlp

    def gelu_t(x):
        return 0.5 * x * (1 + jnp.tanh(jnp.sqrt(2 / jnp.pi) * (x + 0.044715 * x ** 3)))

    nh, gate_msa, shift_mlp, scale_mlp, gate_mlp = adaln(h, P['ada_w'], P['ada_b'])
    nc, c_gate_msa, c_shift_mlp, c_scale_mlp, c_gate_mlp = adaln(c, P['ada_w_c'], P['ada_b_c'])

    B, N, _ = h.shape
    M = c.shape[1]
    q = jnp.concatenate([nh @ P['wq'] + P['bq'], nc @ P['waq'] + P['baq']], axis=1)
    k = jnp.concatenate([nh @ P['wk'] + P['bk'], nc @ P['wak'] + P['bak']], axis=1)
    v = jnp.concatenate([nh @ P['wv'] + P['bv'], nc @ P['wav'] + P['bav']], axis=1)
    Dh = D // heads

    def split(x):
        return x.reshape(B, N + M, heads, Dh).transpose(0, 2, 1, 3)

    qh, kh, vh = split(q), split(k), split(v)
    s = jnp.einsum('bhqd,bhkd->bhqk', qh, kh) / jnp.sqrt(jnp.float32(Dh))
    p = jax.nn.softmax(s, axis=-1)
    o = jnp.einsum('bhqk,bhkd->bhqd', p, vh).transpose(0, 2, 1, 3).reshape(B, N + M, D)
    attn_h = o[:, :N] @ P['wo'] + P['bo']
    attn_c = o[:, N:] @ P['wao'] + P['bao']

    h = h + gate_msa[:, None] * attn_h
    nh2 = ln(h) * (1 + scale_mlp[:, None]) + shift_mlp[:, None]
    ffh = gelu_t(nh2 @ P['ff_w1'] + P['ff_b1']) @ P['ff_w2'] + P['ff_b2']
    h = h + gate_mlp[:, None] * ffh

    c = c + c_gate_msa[:, None] * attn_c
    nc2 = ln(c) * (1 + c_scale_mlp[:, None]) + c_shift_mlp[:, None]
    ffc = gelu_t(nc2 @ P['ffc_w1'] + P['ffc_b1']) @ P['ffc_w2'] + P['ffc_b2']
    c = c + c_gate_mlp[:, None] * ffc
    return c, h


# ----------------------------------- main --------------------------------------

if __name__ == "__main__":
    B, N, M, D, HEADS = 2, 8, 8, 32, 2   # dim=32, heads=2, head_dim=16

    key = jax.random.PRNGKey(0)
    keys = iter(jax.random.split(key, 64))

    def w(shape, scale=0.05):
        return scale * jax.random.normal(next(keys), shape, jnp.float32)

    P = {
        # AdaLayerNormZero (hidden / context streams)
        'ada_w': w((D, 6 * D)), 'ada_b': w((6 * D,)),
        'ada_w_c': w((D, 6 * D)), 'ada_b_c': w((6 * D,)),
        # Attention: to_q / to_k / to_v  (image tokens)
        'wq': w((D, D)), 'bq': w((D,)),
        'wk': w((D, D)), 'bk': w((D,)),
        'wv': w((D, D)), 'bv': w((D,)),
        # Attention: add_q_proj / add_k_proj / add_v_proj  (context tokens)
        'waq': w((D, D)), 'baq': w((D,)),
        'wak': w((D, D)), 'bak': w((D,)),
        'wav': w((D, D)), 'bav': w((D,)),
        # Output projections (to_out[0], to_add_out)
        'wo': w((D, D)), 'bo': w((D,)),
        'wao': w((D, D)), 'bao': w((D,)),
        # FeedForward (gelu-approximate), mult=4
        'ff_w1': w((D, 4 * D)), 'ff_b1': w((4 * D,)),
        'ff_w2': w((4 * D, D)), 'ff_b2': w((D,)),
        'ffc_w1': w((D, 4 * D)), 'ffc_b1': w((4 * D,)),
        'ffc_w2': w((4 * D, D)), 'ffc_b2': w((D,)),
    }

    hidden_states = jax.random.normal(next(keys), (B, N, D), jnp.float32)
    encoder_hidden_states = jax.random.normal(next(keys), (B, M, D), jnp.float32)
    temb = jax.random.normal(next(keys), (B, D), jnp.float32)

    enc_out, hid_out = joint_transformer_block(hidden_states, encoder_hidden_states,
                                               temb, P, HEADS)
    enc_out = jax.block_until_ready(enc_out)
    hid_out = jax.block_until_ready(hid_out)

    enc_ref, hid_ref = reference_forward(hidden_states, encoder_hidden_states,
                                         temb, P, HEADS)
    # bf16 MXU matmuls (f32 accumulation / LayerNorm / softmax) -> relaxed tolerance.
    np.testing.assert_allclose(np.asarray(hid_out), np.asarray(hid_ref),
                               rtol=2e-2, atol=2e-2)
    np.testing.assert_allclose(np.asarray(enc_out), np.asarray(enc_ref),
                               rtol=2e-2, atol=2e-2)
    print("KERNEL_OK")
</pallas_src>

<mosaic_0001>
module attributes {stable_mosaic.version = 11 : i64} {
  func.func @qkv_kernel(%arg0: i32, %arg1: i32, %arg2: memref<1x8x32xf32, #tpu.memory_space<vmem>>, %arg3: memref<1x1x32xf32, #tpu.memory_space<vmem>>, %arg4: memref<1x1x32xf32, #tpu.memory_space<vmem>>, %arg5: memref<32x96xbf16, #tpu.memory_space<vmem>>, %arg6: memref<1x96xf32, #tpu.memory_space<vmem>>, %arg7: memref<1x8x96xbf16, #tpu.memory_space<vmem>>) attributes {dimension_semantics = [#tpu.dimension_semantics<parallel>, #tpu.dimension_semantics<parallel>], iteration_bounds = array<i64: 2, 1>, scalar_prefetch = 0 : i64, scratch_operands = 0 : i64, tpu.core_type = #tpu.core_type<tc>, window_params = [{transform_indices = @transform_0, window_bounds = array<i64: 1, 8, 32>}, {transform_indices = @transform_1, window_bounds = array<i64: 1, 1, 32>}, {transform_indices = @transform_2, window_bounds = array<i64: 1, 1, 32>}, {pipeline_mode = #tpu.pipeline_mode<synchronous>, transform_indices = @transform_3, window_bounds = array<i64: 32, 96>}, {pipeline_mode = #tpu.pipeline_mode<synchronous>, transform_indices = @transform_4, window_bounds = array<i64: 1, 96>}, {transform_indices = @transform_5, window_bounds = array<i64: 1, 8, 96>}]} {
    %c0 = arith.constant 0 : index
    %c0_0 = arith.constant 0 : index
    %c0_1 = arith.constant 0 : index
    %0 = vector.load %arg2[%c0, %c0_0, %c0_1] : memref<1x8x32xf32, #tpu.memory_space<vmem>>, vector<1x8x32xf32>
    %1 = vector.shape_cast %0 : vector<1x8x32xf32> to vector<8x32xf32>
    %cst = arith.constant dense<0.000000e+00> : vector<8xf32>
    %2 = vector.multi_reduction <add>, %1, %cst [1] : vector<8x32xf32> to vector<8xf32>
    %3 = vector.shape_cast %2 : vector<8xf32> to vector<8x1xf32>
    %cst_2 = arith.constant 3.200000e+01 : f32
    %4 = vector.broadcast %cst_2 : f32 to vector<8x1xf32>
    %5 = arith.divf %3, %4 : vector<8x1xf32>
    %6 = vector.broadcast %5 : vector<8x1xf32> to vector<8x32xf32>
    %7 = arith.subf %1, %6 : vector<8x32xf32>
    %8 = arith.mulf %7, %7 : vector<8x32xf32>
    %cst_3 = arith.constant dense<0.000000e+00> : vector<8xf32>
    %9 = vector.multi_reduction <add>, %8, %cst_3 [1] : vector<8x32xf32> to vector<8xf32>
    %10 = vector.shape_cast %9 : vector<8xf32> to vector<8x1xf32>
    %cst_4 = arith.constant 3.200000e+01 : f32
    %11 = vector.broadcast %cst_4 : f32 to vector<8x1xf32>
    %12 = arith.divf %10, %11 : vector<8x1xf32>
    %13 = vector.broadcast %5 : vector<8x1xf32> to vector<8x32xf32>
    %14 = arith.subf %1, %13 : vector<8x32xf32>
    %cst_5 = arith.constant 9.99999997E-7 : f32
    %15 = vector.broadcast %cst_5 : f32 to vector<8x1xf32>
    %16 = arith.addf %12, %15 : vector<8x1xf32>
    %17 = math.rsqrt %16 : vector<8x1xf32>
    %18 = vector.broadcast %17 : vector<8x1xf32> to vector<8x32xf32>
    %19 = arith.mulf %14, %18 : vector<8x32xf32>
    %c0_6 = arith.constant 0 : index
    %c0_7 = arith.constant 0 : index
    %c0_8 = arith.constant 0 : index
    %20 = vector.load %arg4[%c0_6, %c0_7, %c0_8] : memref<1x1x32xf32, #tpu.memory_space<vmem>>, vector<1x1x32xf32>
    %21 = vector.shape_cast %20 : vector<1x1x32xf32> to vector<1x32xf32>
    %cst_9 = arith.constant 1.000000e+00 : f32
    %22 = vector.broadcast %cst_9 : f32 to vector<1x32xf32>
    %23 = arith.addf %22, %21 : vector<1x32xf32>
    %24 = vector.broadcast %23 : vector<1x32xf32> to vector<8x32xf32>
    %25 = arith.mulf %19, %24 : vector<8x32xf32>
    %c0_10 = arith.constant 0 : index
    %c0_11 = arith.constant 0 : index
    %c0_12 = arith.constant 0 : index
    %26 = vector.load %arg3[%c0_10, %c0_11, %c0_12] : memref<1x1x32xf32, #tpu.memory_space<vmem>>, vector<1x1x32xf32>
    %27 = vector.shape_cast %26 : vector<1x1x32xf32> to vector<1x32xf32>
    %28 = vector.broadcast %27 : vector<1x32xf32> to vector<8x32xf32>
    %29 = arith.addf %25, %28 : vector<8x32xf32>
    %30 = arith.truncf %29 : vector<8x32xf32> to vector<8x32xbf16>
    %c0_13 = arith.constant 0 : index
    %c0_14 = arith.constant 0 : index
    %31 = vector.load %arg5[%c0_13, %c0_14] : memref<32x96xbf16, #tpu.memory_space<vmem>>, vector<32x96xbf16>
    %cst_15 = arith.constant dense<0.000000e+00> : vector<8x96xf32>
    %32 = tpu.matmul %30, %31, %cst_15 {dimension_numbers = #tpu.dot_dimension_numbers<[1], [0], [0], [1], [0, 0, 1, 1], [], []>} : vector<8x32xbf16>, vector<32x96xbf16>, vector<8x96xf32> -> vector<8x96xf32>
    %c0_16 = arith.constant 0 : index
    %c0_17 = arith.constant 0 : index
    %33 = vector.load %arg6[%c0_16, %c0_17] : memref<1x96xf32, #tpu.memory_space<vmem>>, vector<1x96xf32>
    %34 = vector.broadcast %33 : vector<1x96xf32> to vector<8x96xf32>
    %35 = arith.addf %32, %34 : vector<8x96xf32>
    %36 = arith.truncf %35 : vector<8x96xf32> to vector<8x96xbf16>
    %c0_18 = arith.constant 0 : index
    %c0_19 = arith.constant 0 : index
    %c0_20 = arith.constant 0 : index
    %37 = vector.load %arg7[%c0_18, %c0_19, %c0_20] : memref<1x8x96xbf16, #tpu.memory_space<vmem>>, vector<1x8x96xbf16>
    %38 = vector.shape_cast %37 : vector<1x8x96xbf16> to vector<8x96xbf16>
    %39 = vector.shape_cast %36 : vector<8x96xbf16> to vector<1x8x96xbf16>
    tpu.vector_store %arg7[%c0_18, %c0_19, %c0_20], %39 {strides = array<i32>} : memref<1x8x96xbf16, #tpu.memory_space<vmem>>, vector<1x8x96xbf16>,
    return
  }
  func.func @transform_0(%arg0: i32, %arg1: i32) -> (i32, i32, i32) {
    %c0_i32 = arith.constant 0 : i32
    %c0_i32_0 = arith.constant 0 : i32
    return %arg0, %arg1, %c0_i32 : i32, i32, i32
  }
  func.func @transform_1(%arg0: i32, %arg1: i32) -> (i32, i32, i32) {
    %c0_i32 = arith.constant 0 : i32
    %c0_i32_0 = arith.constant 0 : i32
    %c0_i32_1 = arith.constant 0 : i32
    return %arg0, %c0_i32, %c0_i32_0 : i32, i32, i32
  }
  func.func @transform_2(%arg0: i32, %arg1: i32) -> (i32, i32, i32) {
    %c0_i32 = arith.constant 0 : i32
    %c0_i32_0 = arith.constant 0 : i32
    %c0_i32_1 = arith.constant 0 : i32
    return %arg0, %c0_i32, %c0_i32_0 : i32, i32, i32
  }
  func.func @transform_3(%arg0: i32, %arg1: i32) -> (i32, i32) {
    %c0_i32 = arith.constant 0 : i32
    %c0_i32_0 = arith.constant 0 : i32
    %c0_i32_1 = arith.constant 0 : i32
    return %c0_i32, %c0_i32_0 : i32, i32
  }
  func.func @transform_4(%arg0: i32, %arg1: i32) -> (i32, i32) {
    %c0_i32 = arith.constant 0 : i32
    %c0_i32_0 = arith.constant 0 : i32
    %c0_i32_1 = arith.constant 0 : i32
    return %c0_i32, %c0_i32_0 : i32, i32
  }
  func.func @transform_5(%arg0: i32, %arg1: i32) -> (i32, i32, i32) {
    %c0_i32 = arith.constant 0 : i32
    %c0_i32_0 = arith.constant 0 : i32
    return %arg0, %arg1, %c0_i32 : i32, i32, i32
  }
}

</mosaic_0001>

<bundles_post_ra>
// kernel: tpu_custom_call.1
= control target key start
LH: loop header
LB: loop body
LE: loop exit
PB: predicated region body
PF: predicated region fallthrough
CT: control target
= control target key end

     0   :  { %s1122_s0 = inlined_call_operand.hbm [shape: f32[2,8,32], index: 0, kind: input, shape index: {}]   ;;  %s1123_s1 = inlined_call_operand.hbm [shape: f32[2,1,32], index: 1, kind: input, shape index: {}]   ;;  %s1124_s2 = inlined_call_operand.hbm [shape: f32[2,1,32], index: 2, kind: input, shape index: {}]   ;;  %s1125_s3 = inlined_call_operand.hbm [shape: bf16[32,96], index: 3, kind: input, shape index: {}]   ;;  %s1126_s4 = inlined_call_operand.vmem [shape: f32[1,96], index: 4, kind: input, shape index: {}]   ;;  %s1127_s5 = inlined_call_operand.hbm [shape: bf16[2,8,96], index: 5, kind: output, shape index: {}]  }
   0x1   :  { %1137 = sst [smem:[#allocation22_spill]] %s1123_s1 }
   0x2   :  { %1138 = sst [smem:[#allocation23_spill]] %s1125_s3 }
   0x3   :  { %1139 = sst [smem:[#allocation24_spill]] %s1127_s5 }
   0x4   :  { %10 = vsyncpa [#allocation3], 0 }
   0x5   :  { %12 = vsyncpa [#allocation3 + $0x1], 0 }
   0x6   :  { %13 = vsyncpa [#allocation6], 0 }
   0x7   :  { %15 = vsyncpa [#allocation6 + $0x1], 0 }
   0x8   :  { %16 = vsyncpa [#allocation9], 0 }
   0x9   :  { %17 = vsyncpa [#allocation4], 0 }
   0xa   :  { %19 = vsyncpa [#allocation4 + $0x1], 0  ;;  %s932_s18 = smov 0   ;;  %s934_s19 = smov 0  }
   0xb   :  { %s936_s20 = smov 0   ;;  %s938_s21 = smov 0  }
   0xc   :  { %s940_s22 = smov 0   ;;  %s942_s23 = smov 0  }
   0xd LB: > { %1140 = sst [smem:[#allocation15_spill]] %s876_s18  ;;  %s963_s24 = sadd.s32 4294967295, %s896_s23   ;;  %s896_s23 = sphi %s942_s23, %s25_s23   ;;  %s892_s22 = sphi %s940_s22, %s1165_s22   ;;  %s888_s21 = sphi %s938_s21, %s1164_s21   ;;  %s884_s20 = sphi %s936_s20, %s1160_s20   ;;  %s880_s19 = sphi %s934_s19, %s1163_s19   ;;  %s876_s18 = sphi %s932_s18, %s1162_s18  }
   0xe   : > { %1141 = sst [smem:[#allocation16_spill]] %s884_s20  ;;  %s569_s25 = sadd.s32 4294967294, %s896_s23  }
   0xf   : > { %1142 = sst [smem:[#allocation17_spill]] %s896_s23  ;;  %s37_s26 = sadd.s32 1, %s892_s22 }
  0x10   : > { %s46_s27 = sadd.s32 1, %s884_s20  ;;  %p39_p0 = scmp.ge.s32.totalorder %s37_s26, 2 }
  0x11   : > { %p53_p1 = scmp.ne.s32.totalorder %s884_s20, %s880_s19  ;;  %p54_p2 = scmp.eq.s32.totalorder %s896_s23, 0 }
  0x12   : > { %p59_p3 = scmp.ne.s32.totalorder %s880_s19, %s876_s18  ;;  %s1167_s26 = smov (%p39_p0, %s37_s26), 0 }
  0x13   : > { %1143 = sst [smem:[#allocation18_spill]] %s1167_s26  ;;  %p55_p4 = por %p54_p2, %p53_p1 }
  0x14   : > { %p179_p5 = scmp.eq.s32.totalorder %s963_s24, 1  ;;  %s41_s28 = ssub.s32 %s892_s22, %s1167_s26 }
  0x15   : > { %p185_p6 = scmp.eq.s32.totalorder %s569_s25, 1  ;;  %p44_p7 = scmp.eq.s32.totalorder %s41_s28, 0 }
  0x16   : > { %p978_p8 = por %p179_p5, %p53_p1  ;;  %p572_p10 = scmp.ge.s32.totalorder %s896_s23, 2 }
  0x17   : > { %p985_p9 = por %p185_p6, %p59_p3  ;;  %p625_p11 = scmp.lt.s32.totalorder %s896_s23, 2 }
  0x18   : > { %s1144_s29 = scalar_select %p978_p8, 1, 0 }
  0x19   : > { %s1146_s30 = scalar_select %p985_p9, 1, 0 }
  0x1a   : > { %1145 = sst [smem:[#allocation19_spill]] %s1144_s29  ;;  %s995_s7 = sand.u32 1, %s884_s20  }
  0x1b   : > { %1147 = sst [smem:[#allocation20_spill]] %s1146_s30  ;;  %s242_s8 = sand.u32 1, %s896_s23  }
  0x1c   : > { %s990_s6 = scalar_select %p44_p7, %s884_s20, %s46_s27  }
  0x1d   : > { %p998_p12 = pnand %p625_p11, %p55_p4  ;;  %s1150_s1 = sld [smem:[#allocation22_spill]] }
  0x1e   : > { %1148 = sst [smem:[#allocation21_spill]] %s990_s6  ;;  %s245_s14 = scalar_lea.vmem [#allocation5], %s995_s7 }
  0x1f   : > { %s252_s15 = sshll.u32 %s245_s14, 4  ;;  %s1007_s16 = scalar_lea.sflag [#allocation6], %s242_s8  ;;  %s253_s15 = int_to_ptr.vmem [resolvable:$true] %s252_s15 }
  0x20   : > { %p60_p13 = scmp.eq.s32.totalorder %s963_s24, 0  ;;  %p570_p0 = scmp.ge.s32.totalorder %s896_s23, 1 }
  0x21   : > { %p192_p1 = scmp.lt.s32.totalorder %s896_s23, 3  ;;  %s1152_s3 = sld [smem:[#allocation23_spill]] }
  0x22   : > { %p1020_p2 = por %p60_p13, %p59_p3  ;;  %s898_s8 = smov [#allocation8]  }
  0x23   : > { %s248_s12 = scalar_lea.hbm %s1150_s1, %s892_s22  ;;  %p1027_p4 = pnand %p570_p0, %p192_p1 }
  0x24   : > { %s250_s13 = sshll.u32 %s248_s12, 4  ;;  %s205_s11 = sshll.u32 %s898_s8, 4  ;;  %s251_s13 = int_to_ptr.hbm [resolvable:$true] %s250_s13  ;;  %s206_s11 = int_to_ptr.vmem [resolvable:$true] %s205_s11 }
  0x25   : > { %616 = dma.hbm_to_vmem [thread:$0]  (!%p998_p12), %s251_s13, 16, %s253_s15, %s1007_s16  }
  0x26   : > { %p606_p5 = pneg %p1027_p4  ;;  %s573_s12 = sshll.u32 %s995_s7, 3 }
  0x27   : > { %s203_s28 = sshll.u32 %s1152_s3, 4  ;;  %s574_s13 = sshll.u32 %s892_s22, 3  ;;  %s204_s28 = int_to_ptr.hbm [resolvable:$true] %s203_s28 }
  0x28   : > { %p607_p3 = pnand %p606_p5, %p60_p13  ;;  %s899_s14 = smov 64  }
  0x29   : > { %s900_s15 = smov 4   ;;  %s231_s1 = scalar_lea.hbm %s1122_s0, %s574_s13 }
  0x2a   : > { %609 = dma.hbm_to_vmem [thread:$0]  (!%p607_p3), %s204_s28, 256, %s206_s11, [#allocation9], %s899_s14, %s899_s14, %s900_s15  }
  0x2b   : > { %s226_s3 = scalar_lea.vmem [#allocation2], %s573_s12  ;;  %s233_s6 = sshll.u32 %s231_s1, 4  ;;  %s234_s6 = int_to_ptr.hbm [resolvable:$true] %s233_s6 }
  0x2c   : > { %s235_s26 = sshll.u32 %s226_s3, 4  ;;  %s223_s8 = scalar_lea.sflag [#allocation3], %s995_s7  ;;  %s236_s26 = int_to_ptr.vmem [resolvable:$true] %s235_s26 }
  0x2d   : > { %613 = dma.hbm_to_vmem [thread:$0]  (!%p998_p12), %s234_s6, 128, %s236_s26, %s223_s8  }
  0x2e   : > { %s265_s30 = scalar_lea.hbm %s1124_s2, %s892_s22  ;;  %s262_s18 = scalar_lea.vmem [#allocation7], %s995_s7 }
  0x2f   : > { %s269_s29 = sshll.u32 %s262_s18, 4  ;;  %s267_s5 = sshll.u32 %s265_s30, 4  ;;  %s270_s29 = int_to_ptr.vmem [resolvable:$true] %s269_s29  ;;  %s268_s5 = int_to_ptr.hbm [resolvable:$true] %s267_s5 }
  0x30   : > { %619 = dma.hbm_to_vmem [thread:$0]  (!%p998_p12), %s268_s5, 16, %s270_s29, %s1007_s16  }
  0x31   : > { %278 = sbr.rel (%p1027_p4) target bundleno = 465 (0x1d1), region = 40  ;;  %s1054_s1 = sand.u32 (!%p1027_p4), 1, %s880_s19  }
  0x32   : > { %s576_s3 = sshll.u32 (!%p1027_p4), %s1054_s1, 3  ;;  %s281_s26 = scalar_lea.sflag (!%p1027_p4), [#allocation3], %s1054_s1 }
  0x33   : > { %s284_s20 = scalar_lea.vmem (!%p1027_p4), [#allocation2], %s576_s3 }
  0x36   : > { %859 = dma.done.wait (%p1020_p2), %s281_s26, 128  }
  0x37   : > { %861 = vsyncadd (%p1020_p2), %s281_s26, 4294967168  ;;  %s290_s5 = sand.u32 1, %s963_s24   ;;  %s293_s23 = scalar_lea.vmem [#allocation5], %s1054_s1 }
  0x38   : > { %s291_s18 = scalar_lea.sflag [#allocation6], %s290_s5 }
  0x39   : > { %863 = dma.done.wait (%p1020_p2), %s291_s18, 32  }
  0x3a   : > { %865 = vsyncadd (%p1020_p2), %s291_s18, 4294967264  ;;  %s302_s29 = scalar_lea.vmem [#allocation7], %s1054_s1 }
  0x3b   : > { %867 = dma.done.wait (%p60_p13), [#allocation9], 256  }
  0x3c   : > { %869 = vsyncadd (%p60_p13), [#allocation9], 4294967040  ;;  %vm345_vm0 = vcmask 261120   ;;  %v344_v0 = vld [vmem:[%s284_s20] sm:$0xff]  ;;  %v901_v2 = vmov 32.0   ;;  %v592_v15 = vld [vmem:[#allocation8] sm:$0xff] }
  0x3d   : > { %v346_v1 = vsel %vm345_vm0, %v344_v0, 0.0  ;;  %682 = vrcp.f32 %v901_v2  ;;  %v593_v14 = vld [vmem:[#allocation8 + $0x8] sm:$0xff]  ;;  %s578_s24 = sshll.u32 %s1054_s1, 2  ;;  %s589_s30 = sshll.u32 %s888_s21, 2  ;;  %vm424_vm5 = vcmask 781312  }
  0x3e   : > { %347 = vadd.xlane.f32.xlu0 %v346_v1  ;;  %416 = vmatpush.bf16.msra.mxu0 %v593_v14  ;;  %v375_v22 = vld [vmem:[%s302_s29] sm:$0x1]  ;;  %s1154_s17 = sld [smem:[#allocation24_spill]]  ;;  %s342_s11 = scalar_lea.vmem [#allocation10], %s578_s24 }
  0x3f   : > { %v376_v24 = vadd.f32 1.0, %v375_v22  ;;  %v680_v30 = vld [vmem:[%s293_s23] ss:$0 sm:$0xff]  ;;  %s440_s12 = sshll.u32 %s342_s11, 4  ;;  %s427_s21 = scalar_lea.sflag [#allocation4], %s1054_s1  ;;  %s441_s12 = int_to_ptr.vmem [resolvable:$true] %s440_s12 }
  0x40   : > { %v681_v34 = vld [vmem:[%s1126_s4] ss:$0 sm:$0xff] }
  0x41   : > { %v378_v27 = vperm.slane %v376_v24, 0 }
  0x42   : > { %417 = vmatpush.bf16.msra.mxu0 %v592_v15 }
  0x43   : > { %v683_v3 = vpop.eup %682 }
  0x44   : > { %v350_v4 = vmul.f32 32.0, %v683_v3  ;;  %vm354_vm1 = vweird.f32 %v683_v3  ;;  %s438_s28 = scalar_lea.hbm %s1154_s17, %s589_s30  ;;  %s826_s8 = scalar_lea.hbm %s1154_s17, 8 }
  0x45   : > { %s442_s13 = sshll.u32 %s438_s28, 4  ;;  %s443_s13 = int_to_ptr.hbm [resolvable:$true] %s442_s13 }
  0x46   : > { %v351_v5 = vsub.f32 1.0, %v350_v4  ;;  %s820_s14 = sshra.s32 %s443_s13, 4  ;;  %s821_s14 = int_to_ptr.hbm [resolvable:$true] %s820_s14 }
  0x47   : > { %s822_s15 = scalar_lea.hbm %s821_s14, 4  ;;  %p827_p12 = scmp.lt.s32.totalorder %s821_s14, %s1154_s17 }
  0x48   : > { %v352_v6 = vmul.f32 %v683_v3, %v351_v5  ;;  %p823_p6 = scmp.ne.s32.totalorder %s821_s14, %s822_s15  ;;  %p828_p13 = scmp.lt.s32.totalorder %s826_s8, %s822_s15 }
  0x4a   : > { %v353_v7 = vadd.f32 %v683_v3, %v352_v6  ;;  %p824_p7 = pnand %p823_p6, %p978_p8  ;;  %p829_p0 = por %p828_p13, %p827_p12 }
  0x4c   : > { %v355_v8 = vsel %vm354_vm1, %v683_v3, %v353_v7  ;;  %p825_p11 = pneg %p824_p7 }
  0x4e   : > { %p830_p1 = pnand %p829_p0, %p825_p11 }
  0xb1   : > { %v348_v9 = vpop.xlane.xlu0 %347 }
  0xb2   : > { %v356_v10 = vmul.f32 %v355_v8, %v348_v9 }
  0xb4   : > { %v357_v11 = vsub.f32 %v344_v0, %v356_v10 }
  0xb6   : > { %v358_v12 = vmul.f32 %v357_v11, %v357_v11 }
  0xb8   : > { %v359_v13 = vsel %vm345_vm0, %v358_v12, 0.0 }
  0xb9   : > { %360 = vadd.xlane.f32.xlu0 %v359_v13 }
 0x12c   : > { %v361_v16 = vpop.xlane.xlu0 %360 }
 0x12d   : > { %v362_v17 = vmul.f32 %v361_v16, %v355_v8 }
 0x12f   : > { %v363_v18 = vadd.f32 1e-06, %v362_v17 }
 0x131   : > { %684 = vrsqrt.f32 %v363_v18  ;;  %vm370_vm3 = vweird.f32 %v363_v18 }
 0x137   : > { %v685_v19 = vpop.eup %684 }
 0x138   : > { %v365_v20 = vmul.f32 %v685_v19, %v363_v18  ;;  %vm371_vm2 = vweird.f32 %v685_v19 }
 0x139   : > { %vm372_vm4 = vmor %vm370_vm3, %vm371_vm2 }
 0x13a   : > { %v366_v21 = vmul.f32 %v685_v19, %v365_v20 }
 0x13c   : > { %v367_v23 = vmul.f32 0.5, %v366_v21 }
 0x13e   : > { %v368_v25 = vsub.f32 1.5, %v367_v23 }
 0x140   : > { %v369_v26 = vmul.f32 %v685_v19, %v368_v25 }
 0x142   : > { %v373_v28 = vsel %vm372_vm4, %v685_v19, %v369_v26 }
 0x143   : > { %v374_v29 = vmul.f32 %v373_v28, %v357_v11 }
 0x145   : > { %v380_v31 = vmul.f32 %v378_v27, %v374_v29 }
 0x147   : > { %v385_v32 = vadd.f32 %v680_v30, %v380_v31 }
 0x149   : > { %v386_v33 = vpack.c.bf16 %v385_v32, %v385_v32 }
 0x14b   : > { %587 = vmatmul.msk.bf16.vlgmr.msra.gmra.mxu0 %vm345_vm0, %v386_v33 }
 0x1c8   : > { %v419_v35 = vpop.f32.mrf.mxu0 }
 0x1c9   : > { %v420_v36 = vadd.f32 %v681_v34, %v419_v35 }
 0x1cb   : > { %v423_v37 = vpack.c.bf16 %v420_v36, %v420_v36 }
 0x1cd   : > { %425 = vst.msk [vmem:[%s342_s11] sm:$0xf] %vm424_vm5, %v423_v37 }
 0x1ce   : > { %833 = shalt.err (!%p830_p1)
}
 0x1cf   : > { %604 = dma.vmem_to_hbm [thread:$0]  (%p978_p8), %s441_s12, 64, %s443_s13, %s427_s21  }
 0x1d0   : > { %v421_v38 = vpop.f32.mrf.mxu0 }
 0x1d1 PF: > { %s1156_s1 = sld [smem:[#allocation15_spill]]  ;;  %p621_p2 = pnand %p572_p10, %p985_p9 }
 0x1d2   : > { %s1158_s5 = sld [smem:[#allocation17_spill]] }
 0x1d3   : > { %p622_p4 = pneg %p621_p2 }
 0x1d7   : > { %s454_s18 = sand.u32 1, %s1156_s1  }
 0x1d8   : > { %s455_s23 = scalar_lea.sflag [#allocation4], %s454_s18 }
 0x1d9   : > { %871 = dma.done.wait (%p622_p4), %s455_s23, 64  }
 0x1da   : > { %873 = vsyncadd (%p622_p4), %s455_s23, 4294967232  ;;  %s25_s23 = sadd.s32 1, %s1158_s5   ;;  %s1159_s29 = sld [smem:[#allocation16_spill]] }
 0x1db   : > { %p22_p5 = scmp.ge.s32.totalorder %s25_s23, 4   ;;  %s1160_s20 = sld [smem:[#allocation21_spill]] }
 0x1dc   : > { %s1161_s24 = sld [smem:[#allocation18_spill]]  ;;  %s1162_s18 = smov %s880_s19 }
 0x1dd   : > { %s1164_s21 = smov %s892_s22 }
 0x1de   :  { %24 = sbr.rel (!%p22_p5) target bundleno = 13 (0xd), region = 113 }
 0x1e0   : > { %s1163_s19 = smov %s1159_s29 }
 0x1e2   : > { %s1165_s22 = smov %s1161_s24 }
 0x1e3   :  { %461 = vsyncpa [#allocation3], 1 }
 0x1e4   :  { %463 = vsyncpa [#allocation3 + $0x1], 1 }
 0x1e5   :  { %464 = vsyncpa [#allocation6], 1 }
 0x1e6   :  { %466 = vsyncpa [#allocation6 + $0x1], 1 }
 0x1e7   :  { %467 = vsyncpa [#allocation9], 1 }
 0x1e8   :  { %468 = vsyncpa [#allocation4], 1 }
 0x1e9   :  { %470 = vsyncpa [#allocation4 + $0x1], 1 }

</bundles_post_ra>
